<compile_context>
chip_gen: v7x
topology: tpu7x:2x2x1
jax: 0.10.0
libtpu: 0.0.40
codegen_flags: <defaults>
</compile_context>

<pallas_src>
import math

import jax
import jax.numpy as jnp
from jax.experimental import pallas as pl
from jax.experimental.pallas import tpu as pltpu


_LANES = 128
_PACK = 4 * _LANES          # 512 = 128 positions x 4 interleaved channels
_MIN_BLOCK_ROWS = 256       # 0.5 MiB input block floor (amortize ~0.35us/step)
_DEF_BLOCK_ROWS = 2048      # 4 MiB input block: ~12.5 MiB double-buffered VMEM


def _round_up(x, m):
    return ((x + m - 1) // m) * m


def _choose_block_rows(rows, block_rows):
    if block_rows is not None:
        # Caller override; either full extent or a multiple of 8.
        return min(rows, _round_up(max(int(block_rows), 1), 8))
    if rows <= _MIN_BLOCK_ROWS:
        return rows                       # single block, full extent
    # Aim for >= 8 blocks (>= 4 per TensorCore on v7x) for large M, but keep
    # each block between 0.5 MiB and 4 MiB of input traffic.
    br = _round_up(pl.cdiv(rows, 8), 8)
    return max(_MIN_BLOCK_ROWS, min(_DEF_BLOCK_ROWS, br))


def _affinity_kernel(x_ref, sel_ref, b_ref, o_ref):
    # x_ref  : (bm_r, 512) f32 lane-interleaved rows (128 positions x 4 ch)
    # sel_ref: (512, 128)  f32 constant selection-weight matrix (MXU contraction)
    # b_ref  : (1,)        f32 bias in SMEM
    # o_ref  : (bm_r, 128) f32 one affinity per lane (dense, unmasked stores)
    y = jnp.dot(x_ref[...], sel_ref[...], preferred_element_type=jnp.float32)
    o_ref[...] = jnp.maximum(y + b_ref[0], 0.0)


def positional_affinity_net(inputs, weight, bias, *, block_rows=None):
    """Pallas equivalent of PositionalAffinityNet.forward.

    inputs: (..., 4) float32
    weight: (1, 4)   (PyTorch nn.Linear layout: out_features x in_features)
    bias:   (1,)
    returns: (..., 1) float32
    """
    in_features = weight.shape[1]    # 4
    out_features = weight.shape[0]   # 1
    lead_shape = inputs.shape[:-1]
    m = int(math.prod(lead_shape)) if lead_shape else 1

    # Natural row-major layout; only a small tail pad up to a multiple of 128.
    x = inputs.reshape(m, in_features).astype(jnp.float32)
    m_128 = _round_up(max(m, 1), _LANES)
    if m_128 != m:
        x = jnp.pad(x, ((0, m_128 - m), (0, 0)))
    rows = m_128 // _LANES
    # Zero-cost contiguous reshape: (m_128, 4) -> (rows, 512).
    x = x.reshape(rows, _PACK)

    bm_r = _choose_block_rows(rows, block_rows)
    grid = (pl.cdiv(rows, bm_r),)

    # Constant (512, 128) selection-weight matrix: sel[4*j + c, j] = w[c].
    w_vec = weight.reshape(in_features).astype(jnp.float32)
    k_idx = jnp.arange(_PACK)
    j_idx = jnp.arange(_LANES)
    sel = jnp.where((k_idx[:, None] // in_features) == j_idx[None, :],
                    w_vec[k_idx % in_features][:, None],
                    jnp.float32(0.0))                       # (512, 128)

    b_smem = bias.reshape(out_features).astype(jnp.float32)  # (1,)

    # Explicit VMEM budget (identical behavior across v5e/v6e/v7x defaults).
    in_block_bytes = bm_r * _PACK * 4
    out_block_bytes = bm_r * _LANES * 4
    sel_bytes = _PACK * _LANES * 4
    vmem_limit = 2 * (in_block_bytes + out_block_bytes) + 2 * sel_bytes + (2 << 20)
    vmem_limit = int(min(max(vmem_limit, 16 << 20), 48 << 20))

    out = pl.pallas_call(
        _affinity_kernel,
        out_shape=jax.ShapeDtypeStruct((rows, _LANES), jnp.float32),
        grid=grid,
        in_specs=[
            pl.BlockSpec((bm_r, _PACK), lambda i: (i, 0)),        # data stream
            pl.BlockSpec((_PACK, _LANES), lambda i: (0, 0)),      # constant sel
            pl.BlockSpec(memory_space=pltpu.MemorySpace.SMEM),    # bias scalar
        ],
        out_specs=pl.BlockSpec((bm_r, _LANES), lambda i: (i, 0)),
        compiler_params=pltpu.CompilerParams(
            dimension_semantics=("parallel",),   # shard row-blocks across TCs
            vmem_limit_bytes=vmem_limit,
        ),
        cost_estimate=pl.CostEstimate(
            flops=8 * m_128,               # 4 mul + 4 add per element
            transcendentals=0,
            bytes_accessed=20 * m_128,     # 16 B in + 4 B out per element
        ),
    )(x, sel, b_smem)

    # Zero-cost reshapes back to (..., 1); padded tail rows are sliced off.
    return out.reshape(m_128)[:m].reshape(*lead_shape, out_features)


def _reference(inputs, weight, bias):
    y = jnp.einsum("...i,oi->...o", inputs, weight) + bias
    return jnp.maximum(y, 0.0)


if __name__ == "__main__":
    key = jax.random.PRNGKey(0)
    k_x, k_w, k_b, k_x2, k_x3 = jax.random.split(key, 5)

    # Deterministic parameter init mimicking nn.Linear default:
    # U(-1/sqrt(fan_in), 1/sqrt(fan_in)) with fan_in = 4.
    bound = 1.0 / math.sqrt(4.0)
    weight = jax.random.uniform(k_w, (1, 4), jnp.float32, -bound, bound)
    bias = jax.random.uniform(k_b, (1,), jnp.float32, -bound, bound)

    # Small example input consistent with the module: (..., 4).
    x = jax.random.normal(k_x, (2, 8, 4), dtype=jnp.float32)
    out = jax.block_until_ready(positional_affinity_net(x, weight, bias))
    ref = _reference(x, weight, bias)
    assert out.shape == (2, 8, 1), out.shape
    assert jnp.allclose(out, ref, atol=1e-5, rtol=1e-5), (
        float(jnp.max(jnp.abs(out - ref)))
    )

    # Padding / non-multiple-of-128 element count (M = 150).
    x2 = jax.random.normal(k_x2, (3, 50, 4), dtype=jnp.float32)
    out2 = jax.block_until_ready(positional_affinity_net(x2, weight, bias))
    ref2 = _reference(x2, weight, bias)
    assert out2.shape == (3, 50, 1), out2.shape
    assert jnp.allclose(out2, ref2, atol=1e-5, rtol=1e-5), (
        float(jnp.max(jnp.abs(out2 - ref2)))
    )

    # Multi-block grid with a ragged final block (rows=33, block_rows=8 -> grid 5).
    x3 = jax.random.normal(k_x3, (4196, 4), dtype=jnp.float32)
    out3 = jax.block_until_ready(
        positional_affinity_net(x3, weight, bias, block_rows=8))
    ref3 = _reference(x3, weight, bias)
    assert out3.shape == (4196, 1), out3.shape
    assert jnp.allclose(out3, ref3, atol=1e-5, rtol=1e-5), (
        float(jnp.max(jnp.abs(out3 - ref3)))
    )

    print("KERNEL_OK")
</pallas_src>

<mosaic_0001>
module attributes {stable_mosaic.version = 11 : i64} {
  func.func @_affinity_kernel(%arg0: i32, %arg1: memref<1x512xf32, #tpu.memory_space<vmem>>, %arg2: memref<512x128xf32, #tpu.memory_space<vmem>>, %arg3: memref<1xf32, #tpu.memory_space<smem>>, %arg4: memref<1x128xf32, #tpu.memory_space<vmem>>) attributes {dimension_semantics = [#tpu.dimension_semantics<parallel>], iteration_bounds = array<i64: 1>, scalar_prefetch = 0 : i64, scratch_operands = 0 : i64, tpu.core_type = #tpu.core_type<tc>, window_params = [{transform_indices = @transform_0, window_bounds = array<i64: 1, 512>}, {pipeline_mode = #tpu.pipeline_mode<synchronous>, transform_indices = @transform_1, window_bounds = array<i64: 512, 128>}, {transform_indices = @transform_2, window_bounds = array<i64: 1>}, {transform_indices = @transform_3, window_bounds = array<i64: 1, 128>}]} {
    %c0 = arith.constant 0 : index
    %c0_0 = arith.constant 0 : index
    %0 = vector.load %arg1[%c0, %c0_0] : memref<1x512xf32, #tpu.memory_space<vmem>>, vector<1x512xf32>
    %c0_1 = arith.constant 0 : index
    %c0_2 = arith.constant 0 : index
    %1 = vector.load %arg2[%c0_1, %c0_2] : memref<512x128xf32, #tpu.memory_space<vmem>>, vector<512x128xf32>
    %cst = arith.constant dense<0.000000e+00> : vector<1x128xf32>
    %2 = tpu.matmul %0, %1, %cst {dimension_numbers = #tpu.dot_dimension_numbers<[1], [0], [0], [1], [0, 0, 1, 1], [], []>} : vector<1x512xf32>, vector<512x128xf32>, vector<1x128xf32> -> vector<1x128xf32>
    %c0_3 = arith.constant 0 : index
    %3 = memref.load %arg3[%c0_3] : memref<1xf32, #tpu.memory_space<smem>>
    %4 = vector.broadcast %3 : f32 to vector<1x128xf32>
    %5 = arith.addf %2, %4 : vector<1x128xf32>
    %cst_4 = arith.constant 0.000000e+00 : f32
    %6 = vector.broadcast %cst_4 : f32 to vector<1x128xf32>
    %7 = arith.maximumf %5, %6 : vector<1x128xf32>
    %c0_5 = arith.constant 0 : index
    %c0_6 = arith.constant 0 : index
    %8 = vector.load %arg4[%c0_5, %c0_6] : memref<1x128xf32, #tpu.memory_space<vmem>>, vector<1x128xf32>
    tpu.vector_store %arg4[%c0_5, %c0_6], %7 {strides = array<i32>} : memref<1x128xf32, #tpu.memory_space<vmem>>, vector<1x128xf32>,
    return
  }
  func.func @transform_0(%arg0: i32) -> (i32, i32) {
    %c0_i32 = arith.constant 0 : i32
    %c0_i32_0 = arith.constant 0 : i32
    return %arg0, %c0_i32 : i32, i32
  }
  func.func @transform_1(%arg0: i32) -> (i32, i32) {
    %c0_i32 = arith.constant 0 : i32
    %c0_i32_0 = arith.constant 0 : i32
    %c0_i32_1 = arith.constant 0 : i32
    return %c0_i32, %c0_i32_0 : i32, i32
  }
  func.func @transform_2(%arg0: i32) -> i32 {
    %c0_i32 = arith.constant 0 : i32
    %c0_i32_0 = arith.constant 0 : i32
    return %c0_i32 : i32
  }
  func.func @transform_3(%arg0: i32) -> (i32, i32) {
    %c0_i32 = arith.constant 0 : i32
    %c0_i32_0 = arith.constant 0 : i32
    return %arg0, %c0_i32 : i32, i32
  }
}

</mosaic_0001>

<bundles_post_ra>
// kernel: tpu_custom_call.1
= control target key start
LH: loop header
LB: loop body
LE: loop exit
PB: predicated region body
PF: predicated region fallthrough
CT: control target
= control target key end

     0   :  { %9 = vsyncpa [#allocation4], 0  ;;  %s576_s0 = inlined_call_operand.hbm [shape: f32[1,512], index: 0, kind: input, shape index: {}]   ;;  %s577_s1 = inlined_call_operand.hbm [shape: f32[512,128], index: 1, kind: input, shape index: {}]   ;;  %s578_s2 = inlined_call_operand.<no memory space> [shape: f32[1], index: 2, kind: input, shape index: {}]   ;;  %s579_s3 = inlined_call_operand.hbm [shape: f32[1,128], index: 3, kind: output, shape index: {}]  }
   0x1   :  { %10 = vsyncpa [#allocation7], 0 }
   0x2   :  { %11 = vsyncpa [#allocation5], 0  ;;  %s499_s12 = smov [#allocation3]   ;;  %s500_s14 = smov [#allocation6]  }
   0x3   :  { %s18_s13 = sshll.u32 %s499_s12, 4  ;;  %s27_s15 = sshll.u32 %s500_s14, 4  ;;  %s19_s13 = int_to_ptr.vmem [resolvable:$true] %s18_s13  ;;  %s524_s15 = int_to_ptr.vmem [resolvable:$true] %s27_s15 }
   0x4   :  { %s427_s18 = scalar_lea.hbm %s576_s0, 64 }
   0x5   :  { %p428_p0 = scmp.ne.s32.totalorder %s576_s0, %s427_s18  ;;  %p431_p1 = scmp.lt.u32.totalorder %s427_s18, %s576_s0 }
   0x7   :  { %p433_p2 = pnand %p431_p1, %p428_p0 }
   0x9   :  { %436 = shalt.err (!%p433_p2)
}
   0xa   :  { %s437_s23 = scalar_lea.vmem %s19_s13, 64  ;;  %p442_p4 = scmp.lt.s32.totalorder %s19_s13, %s19_s13 }
   0xb   :  { %p438_p3 = scmp.ne.s32.totalorder %s19_s13, %s437_s23  ;;  %p443_p5 = scmp.lt.s32.totalorder %s437_s23, %s437_s23 }
   0xd   :  { %p444_p6 = por %p443_p5, %p442_p4 }
   0xf   :  { %p445_p7 = pnand %p444_p6, %p438_p3 }
  0x11   :  { %448 = shalt.err (!%p445_p7)
}
  0x12   :  { %21 = dma.hbm_to_vmem [thread:$0]  %s576_s0, 64, %s19_s13, [#allocation4]  }
  0x13   :  { %s449_s28 = scalar_lea.hbm %s577_s1, 8192 }
  0x14   :  { %p450_p8 = scmp.ne.s32.totalorder %s577_s1, %s449_s28  ;;  %p453_p9 = scmp.lt.u32.totalorder %s449_s28, %s577_s1 }
  0x16   :  { %p455_p10 = pnand %p453_p9, %p450_p8 }
  0x18   :  { %458 = shalt.err (!%p455_p10)
}
  0x19   :  { %s459_s6 = scalar_lea.vmem %s524_s15, 8192  ;;  %p464_p12 = scmp.lt.s32.totalorder %s524_s15, %s524_s15 }
  0x1a   :  { %p460_p11 = scmp.ne.s32.totalorder %s524_s15, %s459_s6  ;;  %p465_p13 = scmp.lt.s32.totalorder %s459_s6, %s459_s6 }
  0x1c   :  { %p466_p0 = por %p465_p13, %p464_p12 }
  0x1e   :  { %p467_p1 = pnand %p466_p0, %p460_p11 }
  0x20   :  { %470 = shalt.err (!%p467_p1)
}
  0x21   :  { %s501_s0 = smov 128   ;;  %s502_s7 = smov 8  }
  0x22   :  { %33 = dma.hbm_to_vmem [thread:$0]  %s577_s1, 8192, %s524_s15, [#allocation7], %s501_s0, %s501_s0, %s502_s7  }
  0x23   :  { %493 = dma.done.wait [#allocation4], 64  }
  0x24   :  { %494 = vsyncadd [#allocation4], 4294967232 }
  0x25   :  { %495 = dma.done.wait [#allocation7], 8192  }
  0x26   :  { %496 = vsyncadd [#allocation7], 4294959104  ;;  %v59_v0 = vld [vmem:[#allocation6 + $0x80] sm:$0xff]  ;;  %v60_v1 = vld [vmem:[#allocation6 + $0x88] sm:$0xff]  ;;  %v110_v47 = vlaneseq  ;;  %s503_s11 = smov [#allocation8]  }
  0x27   :  { %v43_v2 = vld [vmem:[#allocation6] sm:$0xff]  ;;  %v358_v3 = vpack.c.bf16 %v60_v1, %v59_v0  ;;  %v44_v4 = vld [vmem:[#allocation6 + $0x8] sm:$0xff]  ;;  %v61_v11 = vld [vmem:[#allocation6 + $0x90] sm:$0xff]  ;;  %s278_s12 = sshll.u32 %s503_s11, 4  ;;  %s279_s12 = int_to_ptr.vmem [resolvable:$true] %s278_s12 }
  0x28   :  { %v91_v5 = vld [vmem:[#allocation6 + $0x180] sm:$0xff]  ;;  %v92_v6 = vld [vmem:[#allocation6 + $0x188] sm:$0xff]  ;;  %v360_v7 = vpack.c.bf16 %v44_v4, %v43_v2  ;;  %v62_v13 = vld [vmem:[#allocation6 + $0x98] sm:$0xff]  ;;  %v555_v61 = vshrl.u32 %v110_v47, 7  ;;  %s471_s13 = scalar_lea.vmem %s279_s12, 16  ;;  %s475_s14 = scalar_lea.vmem %s279_s12, 32 }
  0x29   :  { %v390_v8 = vpack.c.bf16 %v92_v6, %v91_v5  ;;  %v75_v9 = vld [vmem:[#allocation6 + $0x100] sm:$0xff]  ;;  %v76_v10 = vld [vmem:[#allocation6 + $0x108] sm:$0xff]  ;;  %359 = vmatprep.subr.bf16.mxu0 %v358_v3  ;;  %v45_v14 = vld [vmem:[#allocation6 + $0x10] sm:$0xff]  ;;  %v362_v16 = vpack.c.bf16 %v62_v13, %v61_v11  ;;  %p472_p2 = scmp.ne.s32.totalorder %s279_s12, %s471_s13  ;;  %p476_p3 = scmp.lt.s32.totalorder %s279_s12, %s279_s12 }
  0x2a   :  { %v392_v12 = vpack.c.bf16 %v76_v10, %v75_v9  ;;  %v46_v15 = vld [vmem:[#allocation6 + $0x18] sm:$0xff]  ;;  %361 = vmatpush3.bf16.msra.mxu0 %v360_v7  ;;  %v93_v18 = vld [vmem:[#allocation6 + $0x190] sm:$0xff]  ;;  %v63_v23 = vld [vmem:[#allocation6 + $0xa0] sm:$0xff]  ;;  %v116_v10 = vsub.s32 1, %v555_v61  ;;  %v124_v11 = vsub.s32 3, %v555_v61  ;;  %p477_p4 = scmp.lt.s32.totalorder %s475_s14, %s471_s13 }
  0x2b   :  { %391 = vmatprep.subr.bf16.mxu1 %v390_v8  ;;  %v364_v17 = vpack.c.bf16 %v46_v15, %v45_v14  ;;  %v94_v19 = vld [vmem:[#allocation6 + $0x198] sm:$0xff]  ;;  %v77_v20 = vld [vmem:[#allocation6 + $0x110] sm:$0xff]  ;;  %v64_v24 = vld [vmem:[#allocation6 + $0xa8] sm:$0xff]  ;;  %363 = vmatprep.subr.bf16.mxu0 %v362_v16 }
  0x2c   :  { %393 = vmatpush3.bf16.msra.mxu1 %v392_v12  ;;  %v394_v21 = vpack.c.bf16 %v94_v19, %v93_v18  ;;  %v78_v22 = vld [vmem:[#allocation6 + $0x118] sm:$0xff]  ;;  %v366_v26 = vpack.c.bf16 %v64_v24, %v63_v23  ;;  %v47_v27 = vld [vmem:[#allocation6 + $0x20] sm:$0xff]  ;;  %v48_v28 = vld [vmem:[#allocation6 + $0x28] sm:$0xff]  ;;  %p478_p5 = por %p477_p4, %p476_p3 }
  0x2d   :  { %v396_v25 = vpack.c.bf16 %v78_v22, %v77_v20  ;;  %v95_v29 = vld [vmem:[#allocation6 + $0x1a0] sm:$0xff]  ;;  %v96_v30 = vld [vmem:[#allocation6 + $0x1a8] sm:$0xff]  ;;  %v368_v33 = vpack.c.bf16 %v48_v28, %v47_v27  ;;  %v65_v35 = vld [vmem:[#allocation6 + $0xb0] sm:$0xff] }
  0x2e   :  { %395 = vmatprep.subr.bf16.mxu1 %v394_v21  ;;  %v79_v31 = vld [vmem:[#allocation6 + $0x120] sm:$0xff]  ;;  %v80_v32 = vld [vmem:[#allocation6 + $0x128] sm:$0xff]  ;;  %365 = vmatpush3.bf16.msra.mxu0 %v364_v17  ;;  %v398_v34 = vpack.c.bf16 %v96_v30, %v95_v29  ;;  %v66_v36 = vld [vmem:[#allocation6 + $0xb8] sm:$0xff]  ;;  %p479_p6 = pnand %p478_p5, %p472_p2 }
  0x2f   :  { %v49_v37 = vld [vmem:[#allocation6 + $0x30] sm:$0xff]  ;;  %367 = vmatprep.subr.bf16.mxu0 %v366_v26  ;;  %v400_v38 = vpack.c.bf16 %v80_v32, %v79_v31  ;;  %v370_v39 = vpack.c.bf16 %v66_v36, %v65_v35  ;;  %v50_v40 = vld [vmem:[#allocation6 + $0x38] sm:$0xff]  ;;  %v67_v46 = vld [vmem:[#allocation6 + $0xc0] sm:$0xff] }
  0x30   :  { %397 = vmatpush3.bf16.msra.mxu1 %v396_v25  ;;  %v97_v41 = vld [vmem:[#allocation6 + $0x1b0] sm:$0xff]  ;;  %v98_v42 = vld [vmem:[#allocation6 + $0x1b8] sm:$0xff]  ;;  %v68_v48 = vld [vmem:[#allocation6 + $0xc8] sm:$0xff]  ;;  %v372_v49 = vpack.c.bf16 %v50_v40, %v49_v37  ;;  %v112_v37 = vsub.s32 0, %v555_v61 }
  0x31   :  { %399 = vmatprep.subr.bf16.mxu1 %v398_v34  ;;  %v402_v43 = vpack.c.bf16 %v98_v42, %v97_v41  ;;  %v81_v44 = vld [vmem:[#allocation6 + $0x130] sm:$0xff]  ;;  %v82_v45 = vld [vmem:[#allocation6 + $0x138] sm:$0xff]  ;;  %v99_v50 = vld [vmem:[#allocation6 + $0x1c0] sm:$0xff]  ;;  %v374_v53 = vpack.c.bf16 %v68_v48, %v67_v46 }
  0x32   :  { %369 = vmatpush3.bf16.msra.mxu0 %v368_v33  ;;  %v100_v51 = vld [vmem:[#allocation6 + $0x1c8] sm:$0xff]  ;;  %v404_v52 = vpack.c.bf16 %v82_v45, %v81_v44  ;;  %v51_v54 = vld [vmem:[#allocation6 + $0x40] sm:$0xff]  ;;  %v69_v59 = vld [vmem:[#allocation6 + $0xd0] sm:$0xff]  ;;  %v108_v44 = vstv %s578_s2 }
  0x33   :  { %371 = vmatprep.subr.bf16.mxu0 %v370_v39  ;;  %v52_v55 = vld [vmem:[#allocation6 + $0x48] sm:$0xff]  ;;  %v83_v56 = vld [vmem:[#allocation6 + $0x140] sm:$0xff]  ;;  %v406_v57 = vpack.c.bf16 %v100_v51, %v99_v50  ;;  %v70_v60 = vld [vmem:[#allocation6 + $0xd8] sm:$0xff]  ;;  %v120_v39 = vsub.s32 2, %v555_v61 }
  0x34   :  { %401 = vmatpush3.bf16.msra.mxu1 %v400_v38  ;;  %v84_v58 = vld [vmem:[#allocation6 + $0x148] sm:$0xff]  ;;  %v101_v62 = vld [vmem:[#allocation6 + $0x1d0] sm:$0xff]  ;;  %v102_v63 = vld [vmem:[#allocation6 + $0x1d8] sm:$0xff]  ;;  %v376_v0 = vpack.c.bf16 %v52_v55, %v51_v54  ;;  %v378_v2 = vpack.c.bf16 %v70_v60, %v69_v59 }
  0x35   :  { %403 = vmatprep.subr.bf16.mxu1 %v402_v43  ;;  %v408_v1 = vpack.c.bf16 %v84_v58, %v83_v56  ;;  %v53_v3 = vld [vmem:[#allocation6 + $0x50] sm:$0xff]  ;;  %v54_v4 = vld [vmem:[#allocation6 + $0x58] sm:$0xff]  ;;  %v410_v6 = vpack.c.bf16 %v102_v63, %v101_v62  ;;  %v71_v8 = vld [vmem:[#allocation6 + $0xe0] sm:$0xff] }
  0x36   :  { %373 = vmatpush3.bf16.msra.mxu0 %v372_v49  ;;  %v85_v5 = vld [vmem:[#allocation6 + $0x150] sm:$0xff]  ;;  %v86_v7 = vld [vmem:[#allocation6 + $0x158] sm:$0xff]  ;;  %v72_v9 = vld [vmem:[#allocation6 + $0xe8] sm:$0xff]  ;;  %v380_v14 = vpack.c.bf16 %v54_v4, %v53_v3 }
  0x37   :  { %375 = vmatprep.subr.bf16.mxu0 %v374_v53  ;;  %v103_v12 = vld [vmem:[#allocation6 + $0x1e0] sm:$0xff]  ;;  %v104_v13 = vld [vmem:[#allocation6 + $0x1e8] sm:$0xff]  ;;  %v412_v16 = vpack.c.bf16 %v86_v7, %v85_v5  ;;  %v382_v17 = vpack.c.bf16 %v72_v9, %v71_v8  ;;  %v42_v20 = vld [vmem:[#allocation3] sm:$0xf] }
  0x38   :  { %405 = vmatpush3.bf16.msra.mxu1 %v404_v52  ;;  %v55_v15 = vld [vmem:[#allocation6 + $0x60] sm:$0xff]  ;;  %v56_v18 = vld [vmem:[#allocation6 + $0x68] sm:$0xff]  ;;  %v414_v21 = vpack.c.bf16 %v104_v13, %v103_v12  ;;  %v73_v23 = vld [vmem:[#allocation6 + $0xf0] sm:$0xff]  ;;  %v117_v25 = vrot.slane %v42_v20, %v116_v10  ;;  %v125_v26 = vrot.slane %v42_v20, %v124_v11  ;;  %v113_v41 = vrot.slane %v42_v20, %v112_v37 }
  0x39   :  { %407 = vmatprep.subr.bf16.mxu1 %v406_v57  ;;  %v87_v19 = vld [vmem:[#allocation6 + $0x160] sm:$0xff]  ;;  %v88_v22 = vld [vmem:[#allocation6 + $0x168] sm:$0xff]  ;;  %v74_v24 = vld [vmem:[#allocation6 + $0xf8] sm:$0xff]  ;;  %v384_v29 = vpack.c.bf16 %v56_v18, %v55_v15  ;;  %v121_v42 = vrot.slane %v42_v20, %v120_v39 }
  0x3a   :  { %377 = vmatpush3.bf16.msra.mxu0 %v376_v0  ;;  %v105_v27 = vld [vmem:[#allocation6 + $0x1f0] sm:$0xff]  ;;  %v106_v28 = vld [vmem:[#allocation6 + $0x1f8] sm:$0xff]  ;;  %194 = vmatprep.mubr.f32.mxu0 %v117_v25  ;;  %v416_v30 = vpack.c.bf16 %v88_v22, %v87_v19  ;;  %v386_v31 = vpack.c.bf16 %v74_v24, %v73_v23 }
  0x3b   :  { %379 = vmatprep.subr.bf16.mxu0 %v378_v2  ;;  %v57_v32 = vld [vmem:[#allocation6 + $0x70] sm:$0xff]  ;;  %v58_v33 = vld [vmem:[#allocation6 + $0x78] sm:$0xff]  ;;  %v418_v34 = vpack.c.bf16 %v106_v28, %v105_v27  ;;  %264 = vmatprep.mubr.f32.mxu1 %v125_v26 }
  0x3c   :  { %409 = vmatpush3.bf16.msra.mxu1 %v408_v1  ;;  %v89_v35 = vld [vmem:[#allocation6 + $0x170] sm:$0xff]  ;;  %v90_v36 = vld [vmem:[#allocation6 + $0x178] sm:$0xff]  ;;  %v388_v38 = vpack.c.bf16 %v58_v33, %v57_v32 }
  0x3d   :  { %411 = vmatprep.subr.bf16.mxu1 %v410_v6  ;;  %v420_v40 = vpack.c.bf16 %v90_v36, %v89_v35 }
  0x3e   :  { %381 = vmatpush3.bf16.msra.mxu0 %v380_v14 }
  0x3f   :  { %383 = vmatprep.subr.bf16.mxu0 %v382_v17 }
  0x40   :  { %413 = vmatpush3.bf16.msra.mxu1 %v412_v16 }
  0x41   :  { %415 = vmatprep.subr.bf16.mxu1 %v414_v21 }
  0x42   :  { %385 = vmatpush3.bf16.msra.mxu0 %v384_v29 }
  0x43   :  { %387 = vmatprep.subr.bf16.mxu0 %v386_v31 }
  0x44   :  { %417 = vmatpush3.bf16.msra.mxu1 %v416_v30 }
  0x45   :  { %419 = vmatprep.subr.bf16.mxu1 %v418_v34 }
  0x46   :  { %389 = vmatpush3.bf16.msra.mxu0 %v388_v38 }
  0x48   :  { %421 = vmatpush3.bf16.msra.mxu1 %v420_v40 }
  0x49   :  { %195 = vmatmul.mubr.f32.vlgmr.msra.gmra.mrb[0].mxu0 %v113_v41 }
  0x4b   :  { %265 = vmatmul.mubr.f32.vlgmr.msra.gmra.mrb[0].mxu1 %v121_v42 }
 0x11c   :  { %v320_v43 = vpop.f32.mrb[0].mxu0 }
 0x11d   :  { %v321_v45 = vpop.f32.mrb[1].mxu0 }
 0x11e   :  { %v355_v46 = vpop.f32.mrb[0].mxu1  ;;  %v322_v47 = vadd.f32 %v321_v45, %v320_v43 }
 0x11f   :  { %v356_v48 = vpop.f32.mrb[1].mxu1 }
 0x120   :  { %v357_v49 = vadd.f32 %v356_v48, %v355_v46  ;;  %v197_v50 = vadd.f32 %v322_v47, %v108_v44 }
 0x122   :  { %v267_v51 = vadd.f32 %v357_v49, %v197_v50 }
 0x124   :  { %v270_v52 = vmax.f32 %v267_v51, 0.0 }
 0x126   :  { %271 = vst [vmem:[#allocation8] sm:$0x1] %v270_v52 }
 0x127   :  { %482 = shalt.err (!%p479_p6)
}
 0x128   :  { %s483_s16 = scalar_lea.hbm %s579_s3, 16 }
 0x129   :  { %p484_p7 = scmp.ne.s32.totalorder %s579_s3, %s483_s16  ;;  %p487_p8 = scmp.lt.u32.totalorder %s483_s16, %s579_s3 }
 0x12b   :  { %p489_p9 = pnand %p487_p8, %p484_p7 }
 0x12d   :  { %492 = shalt.err (!%p489_p9)
}
 0x12e   :  { %281 = dma.vmem_to_hbm [thread:$0]  %s279_s12, 16, %s579_s3, [#allocation5]  }
 0x12f   :  { %497 = dma.done.wait [#allocation5], 16  }
 0x130   :  { %498 = vsyncadd [#allocation5], 4294967280 }
 0x131   :  { %285 = vsyncpa [#allocation4], 1 }
 0x132   :  { %286 = vsyncpa [#allocation7], 1 }
 0x133   :  { %287 = vsyncpa [#allocation5], 1 }

</bundles_post_ra>
